<compile_context>
chip_gen: v7x
topology: tpu7x:2x2x1
jax: 0.10.0
libtpu: 0.0.40
codegen_flags: <defaults>
</compile_context>

<pallas_src>
import jax
import jax.numpy as jnp
from jax.experimental import pallas as pl
from jax.experimental.pallas import tpu as pltpu

IN_FEATURES = 32
OUT_FEATURES = 128
_LN2 = 0.6931471805599453


def _net_kernel(xt_ref, w_ref, b_ref, o_ref):
    # xt_ref: (32, TILE_B)  x transposed (features, batch)
    # w_ref:  (128, 32)     PyTorch Linear weight layout (out_features, in_features)
    # b_ref:  (128, 1)      bias, broadcasts along the lane (batch) axis
    # o_ref:  (1, TILE_B)   lane-dense per-row log-cosh sums
    xt = xt_ref[...]
    w = w_ref[...]
    b = b_ref[...]

    # Dense layer on the MXU in the transposed layout: (128, 32) @ (32, TILE_B).
    y = jnp.dot(w, xt, preferred_element_type=jnp.float32) + b

    # Numerically stable log(cosh(y)) = |y| - ln(2) + log(1 + exp(-2|y|)).
    # 1 exp + 1 log on the EUP; abs/mul/add are free VPU filler.
    a = jnp.abs(y)
    z = a - _LN2 + jnp.log(1.0 + jnp.exp(-2.0 * a))

    # Feature-axis reduction on the MXU (keeps the XLU idle, output stays
    # lane-dense): (1, 128) @ (128, TILE_B) -> (1, TILE_B).
    ones = jnp.ones((1, OUT_FEATURES), jnp.float32)
    o_ref[...] = jnp.dot(ones, z, preferred_element_type=jnp.float32)


def net_2x2x2_dense_forward(x, w, b, *, tile_b=1024):
    """x: (B, 32) f32, w: (128, 32) f32 (PyTorch layout), b: (128,) f32 -> (B, 1) f32."""
    B = x.shape[0]

    # Batch tile: one full-width block for small B; otherwise a lane-aligned
    # tile (multiple of 128), with the batch padded up to a whole number of
    # tiles. Tiles this size keep double-buffered VMEM usage tiny (<1 MiB),
    # well inside v7x's 64 MiB VMEM.
    if B <= tile_b:
        tb = B
        b_pad = B
    else:
        tb = tile_b
        b_pad = pl.cdiv(B, tb) * tb

    xt = jnp.transpose(x)  # (32, B): layout plumbing -> lane-dense batch axis.
    if b_pad != B:
        xt = jnp.pad(xt, ((0, 0), (0, b_pad - B)))
    b2 = b.reshape(OUT_FEATURES, 1)

    cost = pl.CostEstimate(
        flops=2 * b_pad * IN_FEATURES * OUT_FEATURES + 2 * b_pad * OUT_FEATURES,
        transcendentals=2 * b_pad * OUT_FEATURES,
        bytes_accessed=4 * (xt.size + w.size + b2.size + b_pad),
    )

    out = pl.pallas_call(
        _net_kernel,
        out_shape=jax.ShapeDtypeStruct((1, b_pad), jnp.float32),
        grid=(b_pad // tb,),
        in_specs=[
            pl.BlockSpec((IN_FEATURES, tb), lambda i: (0, i)),
            pl.BlockSpec((OUT_FEATURES, IN_FEATURES), lambda i: (0, 0)),
            pl.BlockSpec((OUT_FEATURES, 1), lambda i: (0, 0)),
        ],
        out_specs=pl.BlockSpec((1, tb), lambda i: (0, i)),
        compiler_params=pltpu.CompilerParams(
            dimension_semantics=("parallel",),
        ),
        cost_estimate=cost,
    )(xt, w, b2)

    return out[0, :B].reshape(B, 1)


def reference_forward(x, w, b):
    y = x @ w.T + b.reshape(1, OUT_FEATURES)
    z = jnp.log(jnp.cosh(y))
    return jnp.sum(z, axis=1, keepdims=True)


if __name__ == "__main__":
    key = jax.random.PRNGKey(0)
    k_x, k_w, k_b, k_x2 = jax.random.split(key, 4)

    # PyTorch-style init: Linear(32, 128), weight (out, in), uniform 1/sqrt(fan_in).
    bound = 1.0 / jnp.sqrt(jnp.float32(IN_FEATURES))
    w = jax.random.uniform(k_w, (OUT_FEATURES, IN_FEATURES), jnp.float32, -bound, bound)
    b = jax.random.uniform(k_b, (OUT_FEATURES,), jnp.float32, -bound, bound)

    # Small shape consistent with the module: x (B, 32).
    B = 8
    x = jax.random.normal(k_x, (B, IN_FEATURES), jnp.float32)

    out = net_2x2x2_dense_forward(x, w, b)
    out = jax.block_until_ready(out)
    ref = reference_forward(x, w, b)
    assert out.shape == (B, 1), out.shape
    assert jnp.allclose(out, ref, atol=1e-4, rtol=1e-4), (out, ref)

    # Exercise the tiled / padded multi-block path (grid > 1, remainder tile).
    B2 = 300
    x2 = jax.random.normal(k_x2, (B2, IN_FEATURES), jnp.float32)
    out2 = net_2x2x2_dense_forward(x2, w, b, tile_b=128)
    out2 = jax.block_until_ready(out2)
    ref2 = reference_forward(x2, w, b)
    assert out2.shape == (B2, 1), out2.shape
    assert jnp.allclose(out2, ref2, atol=1e-4, rtol=1e-4)

    print("KERNEL_OK")
</pallas_src>

<mosaic_0001>
module attributes {stable_mosaic.version = 11 : i64} {
  func.func @_net_kernel(%arg0: i32, %arg1: memref<32x8xf32, #tpu.memory_space<vmem>>, %arg2: memref<128x32xf32, #tpu.memory_space<vmem>>, %arg3: memref<128x1xf32, #tpu.memory_space<vmem>>, %arg4: memref<1x8xf32, #tpu.memory_space<vmem>>) attributes {dimension_semantics = [#tpu.dimension_semantics<parallel>], iteration_bounds = array<i64: 1>, scalar_prefetch = 0 : i64, scratch_operands = 0 : i64, tpu.core_type = #tpu.core_type<tc>, window_params = [{transform_indices = @transform_0, window_bounds = array<i64: 32, 8>}, {pipeline_mode = #tpu.pipeline_mode<synchronous>, transform_indices = @transform_1, window_bounds = array<i64: 128, 32>}, {pipeline_mode = #tpu.pipeline_mode<synchronous>, transform_indices = @transform_2, window_bounds = array<i64: 128, 1>}, {transform_indices = @transform_3, window_bounds = array<i64: 1, 8>}]} {
    %c0 = arith.constant 0 : index
    %c0_0 = arith.constant 0 : index
    %0 = vector.load %arg1[%c0, %c0_0] : memref<32x8xf32, #tpu.memory_space<vmem>>, vector<32x8xf32>
    %c0_1 = arith.constant 0 : index
    %c0_2 = arith.constant 0 : index
    %1 = vector.load %arg2[%c0_1, %c0_2] : memref<128x32xf32, #tpu.memory_space<vmem>>, vector<128x32xf32>
    %c0_3 = arith.constant 0 : index
    %c0_4 = arith.constant 0 : index
    %2 = vector.load %arg3[%c0_3, %c0_4] : memref<128x1xf32, #tpu.memory_space<vmem>>, vector<128x1xf32>
    %cst = arith.constant dense<0.000000e+00> : vector<128x8xf32>
    %3 = tpu.matmul %1, %0, %cst {dimension_numbers = #tpu.dot_dimension_numbers<[1], [0], [0], [1], [0, 0, 1, 1], [], []>} : vector<128x32xf32>, vector<32x8xf32>, vector<128x8xf32> -> vector<128x8xf32>
    %4 = vector.broadcast %2 : vector<128x1xf32> to vector<128x8xf32>
    %5 = arith.addf %3, %4 : vector<128x8xf32>
    %6 = math.absf %5 : vector<128x8xf32>
    %cst_5 = arith.constant 0.693147182 : f32
    %7 = vector.broadcast %cst_5 : f32 to vector<128x8xf32>
    %8 = arith.subf %6, %7 : vector<128x8xf32>
    %cst_6 = arith.constant -2.000000e+00 : f32
    %9 = vector.broadcast %cst_6 : f32 to vector<128x8xf32>
    %10 = arith.mulf %9, %6 : vector<128x8xf32>
    %11 = math.exp %10 : vector<128x8xf32>
    %cst_7 = arith.constant 1.000000e+00 : f32
    %12 = vector.broadcast %cst_7 : f32 to vector<128x8xf32>
    %13 = arith.addf %12, %11 : vector<128x8xf32>
    %14 = math.log %13 : vector<128x8xf32>
    %15 = arith.addf %8, %14 : vector<128x8xf32>
    %cst_8 = arith.constant 1.000000e+00 : f32
    %16 = vector.broadcast %cst_8 : f32 to vector<1x128xf32>
    %cst_9 = arith.constant dense<0.000000e+00> : vector<1x8xf32>
    %17 = tpu.matmul %16, %15, %cst_9 {dimension_numbers = #tpu.dot_dimension_numbers<[1], [0], [0], [1], [0, 0, 1, 1], [], []>} : vector<1x128xf32>, vector<128x8xf32>, vector<1x8xf32> -> vector<1x8xf32>
    %c0_10 = arith.constant 0 : index
    %c0_11 = arith.constant 0 : index
    %18 = vector.load %arg4[%c0_10, %c0_11] : memref<1x8xf32, #tpu.memory_space<vmem>>, vector<1x8xf32>
    tpu.vector_store %arg4[%c0_10, %c0_11], %17 {strides = array<i32>} : memref<1x8xf32, #tpu.memory_space<vmem>>, vector<1x8xf32>,
    return
  }
  func.func @transform_0(%arg0: i32) -> (i32, i32) {
    %c0_i32 = arith.constant 0 : i32
    %c0_i32_0 = arith.constant 0 : i32
    return %c0_i32, %arg0 : i32, i32
  }
  func.func @transform_1(%arg0: i32) -> (i32, i32) {
    %c0_i32 = arith.constant 0 : i32
    %c0_i32_0 = arith.constant 0 : i32
    %c0_i32_1 = arith.constant 0 : i32
    return %c0_i32, %c0_i32_0 : i32, i32
  }
  func.func @transform_2(%arg0: i32) -> (i32, i32) {
    %c0_i32 = arith.constant 0 : i32
    %c0_i32_0 = arith.constant 0 : i32
    %c0_i32_1 = arith.constant 0 : i32
    return %c0_i32, %c0_i32_0 : i32, i32
  }
  func.func @transform_3(%arg0: i32) -> (i32, i32) {
    %c0_i32 = arith.constant 0 : i32
    %c0_i32_0 = arith.constant 0 : i32
    return %c0_i32, %arg0 : i32, i32
  }
}

</mosaic_0001>

<bundles_post_ra>
// kernel: tpu_custom_call.1
= control target key start
LH: loop header
LB: loop body
LE: loop exit
PB: predicated region body
PF: predicated region fallthrough
CT: control target
= control target key end

     0   :  { %vm131_vm0 = vcmask 261120   ;;  %v819_v6 = vmov 0   ;;  %s1101_s0 = inlined_call_operand.vmem [shape: f32[32,8], index: 0, kind: input, shape index: {}]   ;;  %s1102_s1 = inlined_call_operand.vmem [shape: f32[128,32], index: 1, kind: input, shape index: {}]   ;;  %s1103_s2 = inlined_call_operand.vmem [shape: f32[128,1], index: 2, kind: input, shape index: {}]   ;;  %s1104_s3 = inlined_call_operand.hbm [shape: f32[1,8], index: 3, kind: output, shape index: {}]  }
   0x1   :  { %v15_v0 = vld [vmem:[%s1101_s0] sm:$0xff]  ;;  %v16_v1 = vld [vmem:[%s1101_s0 + $0x8] sm:$0xff]  ;;  %v17_v2 = vld [vmem:[%s1101_s0 + $0x10] sm:$0xff]  ;;  %729 = vset.pattern.permute.xlu0 %v819_v6  ;;  %730 = vset.pattern.permute.xlu1 %v819_v6 }
   0x2   :  { %v691_v3 = vpack.c.bf16 %v16_v1, %v15_v0  ;;  %v18_v4 = vld [vmem:[%s1101_s0 + $0x18] sm:$0xff]  ;;  %v19_v5 = vld [vmem:[%s1102_s1] sm:$0xff]  ;;  %v37_v9 = vld [vmem:[%s1103_s2 + $0x10] sm:$0xff] }
   0x3   :  { %v695_v7 = vpack.c.bf16 %v18_v4, %v17_v2  ;;  %632 = vmatprep.mubr.msk.f32.mxu0 %vm131_vm0, %v19_v5  ;;  %v35_v8 = vld [vmem:[%s1103_s2] sm:$0xff]  ;;  %v20_v10 = vld [vmem:[%s1102_s1 + $0x8] sm:$0xff]  ;;  %63 = vperm.xlu1 %730, %v37_v9   ;;  %v21_v12 = vld [vmem:[%s1102_s1 + $0x10] sm:$0xff] }
   0x4   :  { %692 = vmatprep.subr.bf16.mxu0 %v691_v3  ;;  %53 = vperm.xlu0 %729, %v35_v8   ;;  %v36_v11 = vld [vmem:[%s1103_s2 + $0x8] sm:$0xff]  ;;  %v38_v13 = vld [vmem:[%s1103_s2 + $0x18] sm:$0xff]  ;;  %v39_v15 = vld [vmem:[%s1103_s2 + $0x20] sm:$0xff] }
   0x5   :  { %694 = vmatpush3.bf16.msra.mxu0 %v691_v3  ;;  %v22_v14 = vld [vmem:[%s1102_s1 + $0x18] sm:$0xff] }
   0x6   :  { %696 = vmatprep.subr.bf16.mxu0 %v695_v7 }
   0x7   :  { %68 = vperm.xlu1 %730, %v38_v13  }
   0x8   :  { %58 = vperm.xlu0 %729, %v36_v11  }
   0x9   :  { %698 = vmatpush3.bf16.msra.mxu0 %v695_v7 }
   0xc   :  { %633 = vmatmul.mubr.msk.f32.vlgmr.msra.gmra.mrb[0].mxu0 %vm131_vm0, %v20_v10 }
   0xd   :  { %635 = vmatprep.mubr.msk.f32.mxu0 %vm131_vm0, %v21_v12 }
   0xe   :  { %8 = vsyncpa [#allocation3], 0  ;;  %v23_v16 = vld [vmem:[%s1102_s1 + $0x20] sm:$0xff]  ;;  %v40_v17 = vld [vmem:[%s1103_s2 + $0x28] sm:$0xff]  ;;  %73 = vperm.xlu0 %729, %v39_v15   ;;  %v820_v39 = vmov 0.0|0.0   ;;  %vm821_vm1 = vmmov 0  }
   0xf   :  { %v24_v18 = vld [vmem:[%s1102_s1 + $0x28] sm:$0xff]  ;;  %78 = vperm.xlu1 %730, %v40_v17   ;;  %v41_v19 = vld [vmem:[%s1103_s2 + $0x30] sm:$0xff]  ;;  %v42_v21 = vld [vmem:[%s1103_s2 + $0x38] sm:$0xff]  ;;  %699 = vmatprep.subr.bf16.mxu1 %v820_v39  ;;  %v822_v40 = vmov 0.0   ;;  %vm539_vm2 = vcmask 57344  }
  0x10   :  { %636 = vmatmul.mubr.msk.f32.gmra.mrb[2].mxu0 %vm131_vm0, %v22_v14  ;;  %v25_v20 = vld [vmem:[%s1102_s1 + $0x30] sm:$0xff]  ;;  %v26_v22 = vld [vmem:[%s1102_s1 + $0x38] sm:$0xff]  ;;  %v43_v23 = vld [vmem:[%s1103_s2 + $0x40] sm:$0xff]  ;;  %688 = vmatprep.mubr.msk.f32.mxu1 %vm821_vm1, %v822_v40 }
  0x11   :  { %638 = vmatprep.mubr.msk.f32.mxu0 %vm131_vm0, %v23_v16  ;;  %v27_v24 = vld [vmem:[%s1102_s1 + $0x40] sm:$0xff]  ;;  %v44_v25 = vld [vmem:[%s1103_s2 + $0x48] sm:$0xff]  ;;  %v45_v27 = vld [vmem:[%s1103_s2 + $0x50] sm:$0xff] }
  0x12   :  { %83 = vperm.xlu0 %729, %v41_v19   ;;  %v28_v26 = vld [vmem:[%s1102_s1 + $0x48] sm:$0xff]  ;;  %v29_v28 = vld [vmem:[%s1102_s1 + $0x50] sm:$0xff]  ;;  %v46_v29 = vld [vmem:[%s1103_s2 + $0x58] sm:$0xff] }
  0x13   :  { %88 = vperm.xlu1 %730, %v42_v21   ;;  %v30_v30 = vld [vmem:[%s1102_s1 + $0x58] sm:$0xff]  ;;  %v47_v31 = vld [vmem:[%s1103_s2 + $0x60] sm:$0xff]  ;;  %v48_v33 = vld [vmem:[%s1103_s2 + $0x68] sm:$0xff] }
  0x14   :  { %639 = vmatmul.mubr.msk.f32.gmra.mrb[4].mxu0 %vm131_vm0, %v24_v18  ;;  %v31_v32 = vld [vmem:[%s1102_s1 + $0x60] sm:$0xff]  ;;  %v32_v34 = vld [vmem:[%s1102_s1 + $0x68] sm:$0xff]  ;;  %v49_v35 = vld [vmem:[%s1103_s2 + $0x70] sm:$0xff] }
  0x15   :  { %641 = vmatprep.mubr.msk.f32.mxu0 %vm131_vm0, %v25_v20  ;;  %v33_v36 = vld [vmem:[%s1102_s1 + $0x70] sm:$0xff]  ;;  %v50_v37 = vld [vmem:[%s1103_s2 + $0x78] sm:$0xff] }
  0x16   :  { %93 = vperm.xlu0 %729, %v43_v23   ;;  %v34_v38 = vld [vmem:[%s1102_s1 + $0x78] sm:$0xff]  ;;  %s824_s1 = smov [#allocation2]  }
  0x17   :  { %98 = vperm.xlu1 %730, %v44_v25   ;;  %s547_s2 = sshll.u32 %s824_s1, 4  ;;  %s548_s2 = int_to_ptr.vmem [resolvable:$true] %s547_s2 }
  0x18   :  { %642 = vmatmul.mubr.msk.f32.gmra.mrb[6].mxu0 %vm131_vm0, %v26_v22  ;;  %s795_s27 = scalar_lea.vmem %s548_s2, 16  ;;  %s799_s28 = scalar_lea.vmem %s548_s2, 32 }
  0x19   :  { %644 = vmatprep.mubr.msk.f32.mxu0 %vm131_vm0, %v27_v24  ;;  %p796_p0 = scmp.ne.s32.totalorder %s548_s2, %s795_s27  ;;  %p800_p1 = scmp.lt.s32.totalorder %s548_s2, %s548_s2 }
  0x1a   :  { %103 = vperm.xlu0 %729, %v45_v27   ;;  %p801_p2 = scmp.lt.s32.totalorder %s799_s28, %s795_s27 }
  0x1b   :  { %108 = vperm.xlu1 %730, %v46_v29  }
  0x1c   :  { %645 = vmatmul.mubr.msk.f32.gmra.mrb[8].mxu0 %vm131_vm0, %v28_v26  ;;  %p802_p3 = por %p801_p2, %p800_p1 }
  0x1d   :  { %647 = vmatprep.mubr.msk.f32.mxu0 %vm131_vm0, %v29_v28 }
  0x1e   :  { %113 = vperm.xlu0 %729, %v47_v31   ;;  %p803_p4 = pnand %p802_p3, %p796_p0 }
  0x1f   :  { %118 = vperm.xlu1 %730, %v48_v33  }
  0x20   :  { %648 = vmatmul.mubr.msk.f32.gmra.mrb[10].mxu0 %vm131_vm0, %v30_v30 }
  0x21   :  { %650 = vmatprep.mubr.msk.f32.mxu0 %vm131_vm0, %v31_v32 }
  0x22   :  { %123 = vperm.xlu0 %729, %v49_v35  }
  0x23   :  { %128 = vperm.xlu1 %730, %v50_v37  }
  0x24   :  { %651 = vmatmul.mubr.msk.f32.gmra.mrb[12].mxu0 %vm131_vm0, %v32_v34 }
  0x25   :  { %653 = vmatprep.mubr.msk.f32.mxu0 %vm131_vm0, %v33_v36 }
  0x28   :  { %654 = vmatmul.mubr.msk.f32.gmra.mrb[14].mxu0 %vm131_vm0, %v34_v38 }
  0x82   :  { %v64_v41 = vpop.permute.xlu1 %63 }
  0x83   :  { %v54_v42 = vpop.permute.xlu0 %53 }
  0x86   :  { %v69_v43 = vpop.permute.xlu1 %68 }
  0x87   :  { %v59_v44 = vpop.permute.xlu0 %58 }
  0x8d   :  { %v74_v46 = vpop.permute.xlu0 %73 }
  0x8e   :  { %v79_v45 = vpop.permute.xlu1 %78 }
  0x91   :  { %v84_v58 = vpop.permute.xlu0 %83 }
  0x92   :  { %v89_v54 = vpop.permute.xlu1 %88 }
  0x95   :  { %v94_v10 = vpop.permute.xlu0 %93 }
  0x96   :  { %v99_v7 = vpop.permute.xlu1 %98 }
  0x99   :  { %v104_v28 = vpop.permute.xlu0 %103 }
  0x9a   :  { %v109_v24 = vpop.permute.xlu1 %108 }
  0xdf   :  { %v634_v47 = vpop.f32.mrb[0].mxu0 }
  0xe0   :  { %v970_v48 = vadd.f32 %v634_v47, %v59_v44  ;;  %v246_v49 = vpop.f32.mrb[1].mxu0 }
  0xe1   :  { %v972_v50 = vadd.f32 %v246_v49, %v54_v42 }
  0xe2   :  { %v326_v51 = vand.u32 2147483647, %v970_v48 }
  0xe3   :  { %v325_v52 = vand.u32 2147483647, %v972_v50  ;;  %v637_v53 = vpop.f32.mrb[2].mxu0 }
  0xe4   :  { %v358_v55 = vmul.f32 -2.0, %v326_v51  ;;  %v978_v56 = vadd.f32 %v637_v53, %v69_v43  ;;  %v256_v57 = vpop.f32.mrb[3].mxu0 }
  0xe5   :  { %v357_v59 = vmul.f32 -2.0, %v325_v52  ;;  %v982_v60 = vadd.f32 %v256_v57, %v64_v41 }
  0xe6   :  { %v375_v61 = vmul.f32 1.442695, %v358_v55  ;;  %v328_v62 = vand.u32 2147483647, %v978_v56 }
  0xe7   :  { %v373_v63 = vmul.f32 1.442695, %v357_v59  ;;  %v327_v0 = vand.u32 2147483647, %v982_v60  ;;  %v640_v1 = vpop.f32.mrb[4].mxu0 }
  0xe8   :  { %731 = vpow2.f32 %v375_v61  ;;  %v360_v2 = vmul.f32 -2.0, %v328_v62  ;;  %v988_v3 = vadd.f32 %v640_v1, %v79_v45  ;;  %v266_v4 = vpop.f32.mrb[5].mxu0 }
  0xe9   :  { %733 = vpow2.f32 %v373_v63  ;;  %v359_v5 = vmul.f32 -2.0, %v327_v0  ;;  %v992_v6 = vadd.f32 %v266_v4, %v74_v46  ;;  %v119_v46 = vpop.permute.xlu1 %118  ;;  %v573_v56 = vadd.f32 -0.6931472, %v327_v0 }
  0xea   :  { %v379_v8 = vmul.f32 1.442695, %v360_v2  ;;  %v330_v9 = vand.u32 2147483647, %v988_v3 }
  0xeb   :  { %v377_v11 = vmul.f32 1.442695, %v359_v5  ;;  %v329_v12 = vand.u32 2147483647, %v992_v6  ;;  %v643_v13 = vpop.f32.mrb[6].mxu0 }
  0xec   :  { %735 = vpow2.f32 %v379_v8  ;;  %v362_v14 = vmul.f32 -2.0, %v330_v9  ;;  %v998_v15 = vadd.f32 %v643_v13, %v89_v54  ;;  %v276_v16 = vpop.f32.mrb[7].mxu0  ;;  %v114_v54 = vpop.permute.xlu0 %113 }
  0xed   :  { %737 = vpow2.f32 %v377_v11  ;;  %v361_v17 = vmul.f32 -2.0, %v329_v12  ;;  %v1002_v18 = vadd.f32 %v276_v16, %v84_v58  ;;  %v575_v60 = vadd.f32 -0.6931472, %v329_v12 }
  0xee   :  { %v383_v19 = vmul.f32 1.442695, %v362_v14  ;;  %v332_v20 = vand.u32 2147483647, %v998_v15 }
  0xef   :  { %v381_v21 = vmul.f32 1.442695, %v361_v17  ;;  %v331_v22 = vand.u32 2147483647, %v1002_v18  ;;  %v646_v23 = vpop.f32.mrb[8].mxu0 }
  0xf0   :  { %739 = vpow2.f32 %v383_v19  ;;  %v364_v25 = vmul.f32 -2.0, %v332_v20  ;;  %v1008_v26 = vadd.f32 %v646_v23, %v99_v7  ;;  %v286_v27 = vpop.f32.mrb[9].mxu0  ;;  %v129_v19 = vpop.permute.xlu1 %128 }
  0xf1   :  { %741 = vpow2.f32 %v381_v21  ;;  %v363_v29 = vmul.f32 -2.0, %v331_v22  ;;  %v1012_v30 = vadd.f32 %v286_v27, %v94_v10 }
  0xf2   :  { %v732_v31 = vpop.eup %731  ;;  %v387_v32 = vmul.f32 1.442695, %v364_v25  ;;  %v334_v33 = vand.u32 2147483647, %v1008_v26  ;;  %v124_v25 = vpop.permute.xlu0 %123 }
  0xf3   :  { %v734_v34 = vpop.eup %733  ;;  %v406_v35 = vadd.f32 1.0, %v732_v31  ;;  %v385_v36 = vmul.f32 1.442695, %v363_v29  ;;  %v333_v37 = vand.u32 2147483647, %v1012_v30  ;;  %v649_v38 = vpop.f32.mrb[10].mxu0 }
  0xf4   :  { %v405_v40 = vadd.f32 1.0, %v734_v34  ;;  %743 = vpow2.f32 %v387_v32  ;;  %v366_v41 = vmul.f32 -2.0, %v334_v33  ;;  %v296_v42 = vpop.f32.mrb[11].mxu0  ;;  %v1020_v44 = vadd.f32 %v649_v38, %v109_v24 }
  0xf5   :  { %745 = vlog2.f32 %v406_v35  ;;  %v365_v43 = vmul.f32 -2.0, %v333_v37  ;;  %v1022_v49 = vadd.f32 %v296_v42, %v104_v28  ;;  %v572_v42 = vadd.f32 -0.6931472, %v326_v51 }
  0xf6   :  { %v736_v45 = vpop.eup %735  ;;  %747 = vlog2.f32 %v405_v40  ;;  %v391_v47 = vmul.f32 1.442695, %v366_v41  ;;  %v336_v58 = vand.u32 2147483647, %v1020_v44 }
  0xf7   :  { %v738_v53 = vpop.eup %737  ;;  %v408_v55 = vadd.f32 1.0, %v736_v45  ;;  %749 = vpow2.f32 %v385_v36  ;;  %v389_v57 = vmul.f32 1.442695, %v365_v43  ;;  %v652_v59 = vpop.f32.mrb[12].mxu0  ;;  %v335_v63 = vand.u32 2147483647, %v1022_v49 }
  0xf8   :  { %v407_v61 = vadd.f32 1.0, %v738_v53  ;;  %751 = vpow2.f32 %v391_v47  ;;  %v1026_v1 = vadd.f32 %v652_v59, %v119_v46  ;;  %v306_v2 = vpop.f32.mrb[13].mxu0  ;;  %v368_v4 = vmul.f32 -2.0, %v336_v58 }
  0xf9   :  { %753 = vlog2.f32 %v408_v55  ;;  %v1030_v5 = vadd.f32 %v306_v2, %v114_v54  ;;  %v367_v8 = vmul.f32 -2.0, %v335_v63  ;;  %v571_v47 = vadd.f32 -0.6931472, %v325_v52 }
  0xfa   :  { %v740_v7 = vpop.eup %739  ;;  %755 = vlog2.f32 %v407_v61  ;;  %v338_v10 = vand.u32 2147483647, %v1026_v1  ;;  %v395_v14 = vmul.f32 1.442695, %v368_v4  ;;  %v581_v30 = vadd.f32 -0.6931472, %v335_v63 }
  0xfb   :  { %v742_v11 = vpop.eup %741  ;;  %v410_v13 = vadd.f32 1.0, %v740_v7  ;;  %757 = vpow2.f32 %v389_v57  ;;  %v337_v16 = vand.u32 2147483647, %v1030_v5  ;;  %v655_v17 = vpop.f32.mrb[14].mxu0  ;;  %v393_v23 = vmul.f32 1.442695, %v367_v8 }
  0xfc   :  { %v409_v21 = vadd.f32 1.0, %v742_v11  ;;  %v370_v24 = vmul.f32 -2.0, %v338_v10  ;;  %v1040_v28 = vadd.f32 %v655_v17, %v129_v19  ;;  %v316_v29 = vpop.f32.mrb[15].mxu0  ;;  %v574_v57 = vadd.f32 -0.6931472, %v328_v62 }
  0xfd   :  { %759 = vlog2.f32 %v410_v13  ;;  %v369_v27 = vmul.f32 -2.0, %v337_v16  ;;  %v1042_v34 = vadd.f32 %v316_v29, %v124_v25  ;;  %v583_v44 = vadd.f32 -0.6931472, %v337_v16 }
  0xfe   :  { %v744_v31 = vpop.eup %743  ;;  %761 = vlog2.f32 %v409_v21  ;;  %v399_v32 = vmul.f32 1.442695, %v370_v24  ;;  %v340_v40 = vand.u32 2147483647, %v1040_v28  ;;  %v576_v24 = vadd.f32 -0.6931472, %v330_v9 }
  0xff   :  { %v746_v35 = vpop.eup %745  ;;  %v412_v36 = vadd.f32 1.0, %v744_v31  ;;  %763 = vpow2.f32 %v395_v14  ;;  %v397_v38 = vmul.f32 1.442695, %v369_v27  ;;  %v339_v43 = vand.u32 2147483647, %v1042_v34 }
 0x100   :  { %v748_v41 = vpop.eup %747  ;;  %765 = vpow2.f32 %v393_v23  ;;  %v424_v45 = vmul.f32 0.6931472, %v746_v35  ;;  %v372_v53 = vmul.f32 -2.0, %v340_v40 }
 0x101   :  { %v750_v46 = vpop.eup %749  ;;  %767 = vlog2.f32 %v412_v36  ;;  %v422_v54 = vmul.f32 0.6931472, %v748_v41  ;;  %v371_v48 = vmul.f32 -2.0, %v339_v43  ;;  %v585_v1 = vadd.f32 -0.6931472, %v339_v43 }
 0x102   :  { %v752_v55 = vpop.eup %751  ;;  %v411_v59 = vadd.f32 1.0, %v750_v46  ;;  %769 = vpow2.f32 %v399_v32  ;;  %v403_v2 = vmul.f32 1.442695, %v372_v53  ;;  %v454_v8 = vadd.f32 %v572_v42, %v424_v45 }
 0x103   :  { %v754_v51 = vpop.eup %753  ;;  %v414_v61 = vadd.f32 1.0, %v752_v55  ;;  %771 = vpow2.f32 %v397_v38  ;;  %v453_v50 = vadd.f32 %v571_v47, %v422_v54  ;;  %v401_v7 = vmul.f32 1.442695, %v371_v48 }
 0x104   :  { %v756_v52 = vpop.eup %755  ;;  %v428_v4 = vmul.f32 0.6931472, %v754_v51  ;;  %773 = vlog2.f32 %v411_v59  ;;  %v578_v45 = vadd.f32 -0.6931472, %v332_v20  ;;  %v577_v55 = vadd.f32 -0.6931472, %v331_v22 }
 0x105   :  { %v758_v11 = vpop.eup %757  ;;  %v426_v62 = vmul.f32 0.6931472, %v756_v52  ;;  %775 = vlog2.f32 %v414_v61  ;;  %v700_v17 = vpack.c.bf16 %v454_v8, %v453_v50  ;;  %v580_v51 = vadd.f32 -0.6931472, %v334_v33 }
 0x106   :  { %v456_v13 = vadd.f32 %v574_v57, %v428_v4  ;;  %v413_v14 = vadd.f32 1.0, %v758_v11  ;;  %777 = vpow2.f32 %v403_v2  ;;  %v579_v50 = vadd.f32 -0.6931472, %v333_v37 }
 0x107   :  { %v760_v19 = vpop.eup %759  ;;  %v455_v21 = vadd.f32 %v573_v56, %v426_v62  ;;  %779 = vpow2.f32 %v401_v7  ;;  %701 = vmatpush3.bf16.msra.mxu1 %v700_v17  ;;  %v582_v33 = vadd.f32 -0.6931472, %v336_v58 }
 0x108   :  { %v762_v23 = vpop.eup %761  ;;  %v432_v25 = vmul.f32 0.6931472, %v760_v19  ;;  %781 = vlog2.f32 %v413_v14  ;;  %702 = vmatprep.subr.bf16.mxu1 %v820_v39  ;;  %v584_v19 = vadd.f32 -0.6931472, %v338_v10 }
 0x109   :  { %v764_v27 = vpop.eup %763  ;;  %v430_v0 = vmul.f32 0.6931472, %v762_v23  ;;  %v703_v29 = vpack.c.bf16 %v456_v13, %v455_v21 }
 0x10a   :  { %v766_v31 = vpop.eup %765  ;;  %v458_v32 = vadd.f32 %v576_v24, %v432_v25  ;;  %v416_v35 = vadd.f32 1.0, %v764_v27  ;;  %v586_v27 = vadd.f32 -0.6931472, %v340_v40 }
 0x10b   :  { %v768_v36 = vpop.eup %767  ;;  %v457_v38 = vadd.f32 %v575_v60, %v430_v0  ;;  %v415_v41 = vadd.f32 1.0, %v766_v31  ;;  %704 = vmatpush3.bf16.msra.mxu1 %v703_v29  ;;  %v823_v31 = vmov 1.0  }
 0x10c   :  { %v770_v42 = vpop.eup %769  ;;  %v436_v3 = vmul.f32 0.6931472, %v768_v36  ;;  %783 = vlog2.f32 %v416_v35  ;;  %705 = vmatprep.subr.bf16.mxu1 %v820_v39 }
 0x10d   :  { %v772_v9 = vpop.eup %771  ;;  %785 = vlog2.f32 %v415_v41  ;;  %v418_v6 = vadd.f32 1.0, %v770_v42  ;;  %v706_v12 = vpack.c.bf16 %v458_v32, %v457_v38 }
 0x10e   :  { %v774_v46 = vpop.eup %773  ;;  %v417_v47 = vadd.f32 1.0, %v772_v9  ;;  %v460_v54 = vadd.f32 %v578_v45, %v436_v3 }
 0x10f   :  { %v776_v53 = vpop.eup %775  ;;  %v434_v57 = vmul.f32 0.6931472, %v774_v46  ;;  %787 = vlog2.f32 %v418_v6  ;;  %707 = vmatpush3.bf16.msra.mxu1 %v706_v12 }
 0x110   :  { %v778_v59 = vpop.eup %777  ;;  %v440_v48 = vmul.f32 0.6931472, %v776_v53  ;;  %789 = vlog2.f32 %v417_v47  ;;  %708 = vmatprep.subr.bf16.mxu1 %v820_v39 }
 0x111   :  { %v780_v15 = vpop.eup %779  ;;  %v459_v20 = vadd.f32 %v577_v55, %v434_v57  ;;  %v420_v61 = vadd.f32 1.0, %v778_v59 }
 0x112   :  { %v782_v2 = vpop.eup %781  ;;  %v419_v18 = vadd.f32 1.0, %v780_v15  ;;  %v462_v22 = vadd.f32 %v580_v51, %v440_v48 }
 0x113   :  { %v438_v52 = vmul.f32 0.6931472, %v782_v2  ;;  %791 = vlog2.f32 %v420_v61  ;;  %v709_v4 = vpack.c.bf16 %v460_v54, %v459_v20 }
 0x114   :  { %793 = vlog2.f32 %v419_v18 }
 0x115   :  { %v461_v7 = vadd.f32 %v579_v50, %v438_v52  ;;  %710 = vmatpush3.bf16.msra.mxu1 %v709_v4 }
 0x116   :  { %v784_v8 = vpop.eup %783  ;;  %711 = vmatprep.subr.bf16.mxu1 %v820_v39 }
 0x117   :  { %v786_v26 = vpop.eup %785  ;;  %v444_v11 = vmul.f32 0.6931472, %v784_v8  ;;  %v712_v56 = vpack.c.bf16 %v462_v22, %v461_v7 }
 0x118   :  { %v442_v37 = vmul.f32 0.6931472, %v786_v26 }
 0x119   :  { %v788_v62 = vpop.eup %787  ;;  %v464_v13 = vadd.f32 %v582_v33, %v444_v11  ;;  %713 = vmatpush3.bf16.msra.mxu1 %v712_v56 }
 0x11a   :  { %v790_v14 = vpop.eup %789  ;;  %v463_v17 = vadd.f32 %v581_v30, %v442_v37  ;;  %v448_v21 = vmul.f32 0.6931472, %v788_v62  ;;  %714 = vmatprep.subr.bf16.mxu1 %v820_v39 }
 0x11b   :  { %v446_v58 = vmul.f32 0.6931472, %v790_v14 }
 0x11c   :  { %v466_v23 = vadd.f32 %v584_v19, %v448_v21  ;;  %v715_v24 = vpack.c.bf16 %v464_v13, %v463_v17 }
 0x11d   :  { %v792_v49 = vpop.eup %791  ;;  %v465_v63 = vadd.f32 %v583_v44, %v446_v58 }
 0x11e   :  { %v794_v25 = vpop.eup %793  ;;  %v452_v60 = vmul.f32 0.6931472, %v792_v49  ;;  %716 = vmatpush3.bf16.msra.mxu1 %v715_v24 }
 0x11f   :  { %v450_v10 = vmul.f32 0.6931472, %v794_v25  ;;  %717 = vmatprep.subr.bf16.mxu1 %v820_v39  ;;  %v718_v0 = vpack.c.bf16 %v466_v23, %v465_v63 }
 0x120   :  { %v468_v5 = vadd.f32 %v586_v27, %v452_v60 }
 0x121   :  { %v467_v16 = vadd.f32 %v585_v1, %v450_v10 }
 0x122   :  { %719 = vmatpush3.bf16.msra.mxu1 %v718_v0 }
 0x123   :  { %720 = vmatprep.subr.bf16.mxu1 %v820_v39  ;;  %v721_v29 = vpack.c.bf16 %v468_v5, %v467_v16 }
 0x126   :  { %722 = vmatpush3.bf16.msra.mxu1 %v721_v29 }
 0x129   :  { %689 = vmatmul.mubr.f32.vlgmr.msra.gmra.mrb[0].mxu1 %v823_v31 }
 0x1fc   :  { %v535_v28 = vpop.f32.mrb[0].mxu1 }
 0x1fd   :  { %540 = vst.msk [vmem:[#allocation2] sm:$0x1] %vm539_vm2, %v535_v28  ;;  %v690_v34 = vpop.f32.mrb[1].mxu1 }
 0x1fe   :  { %806 = shalt.err (!%p803_p4)
}
 0x1ff   :  { %s807_s4 = scalar_lea.hbm %s1104_s3, 16 }
 0x200   :  { %p808_p5 = scmp.ne.s32.totalorder %s1104_s3, %s807_s4  ;;  %p811_p6 = scmp.lt.u32.totalorder %s807_s4, %s1104_s3 }
 0x202   :  { %p813_p7 = pnand %p811_p6, %p808_p5 }
 0x204   :  { %816 = shalt.err (!%p813_p7)
}
 0x205   :  { %550 = dma.vmem_to_hbm [thread:$0]  %s548_s2, 16, %s1104_s3, [#allocation3]  }
 0x206   :  { %817 = dma.done.wait [#allocation3], 16  }
 0x207   :  { %818 = vsyncadd [#allocation3], 4294967280 }
 0x208   :  { %554 = vsyncpa [#allocation3], 1 }

</bundles_post_ra>
